<compile_context>
chip_gen: v6e
topology: v6e:2x2x1
jax: 0.10.0
libtpu: 0.0.40
codegen_flags: <defaults>
</compile_context>

<pallas_src>
import jax
import jax.numpy as jnp
from jax.experimental import pallas as pl
from jax.experimental.pallas import tpu as pltpu


def _cbam_kernel(x_ref, w1_ref, w2_ref, t_ref, o_ref):
    x = x_ref[...].astype(jnp.float32)              # (B, C, L)
    B, C, L = x.shape
    Ch = w1_ref.shape[0]

    # ---------------- Channel attention (C stays on sublanes) ---------------
    avg_c = jnp.mean(x, axis=2, keepdims=True)      # (B, C, 1)  AdaptiveAvgPool1d(1)
    max_c = jnp.max(x, axis=2, keepdims=True)       # (B, C, 1)  AdaptiveMaxPool1d(1)
    pooled = jnp.concatenate([avg_c, max_c], axis=2)             # (B, C, 2)

    # Shared 1x1-conv MLP, batched over (batch x {avg,max}) via a batched
    # matmul; C never leaves the sublane axis so no relayout is needed later.
    w1b = jnp.broadcast_to(w1_ref[...], (B, Ch, C))  # tiny, hoisted once per step
    w2b = jnp.broadcast_to(w2_ref[...], (B, C, Ch))
    h = jnp.maximum(
        jnp.einsum("boc,bcp->bop", w1b, pooled,
                   preferred_element_type=jnp.float32), 0.0)     # (B, Ch, 2)
    mlp = jnp.einsum("bco,bop->bcp", w2b, h,
                     preferred_element_type=jnp.float32)         # (B, C, 2)
    # fc(avg) + fc(max) == sum over the {avg, max} lane pair.
    ca = jax.nn.sigmoid(jnp.sum(mlp, axis=2, keepdims=True))     # (B, C, 1)

    # ---------------- Spatial attention (single MXU matmul) -----------------
    avg_s = jnp.mean(x, axis=1)                     # (B, L)  mean over channels
    max_s = jnp.max(x, axis=1)                      # (B, L)  max over channels
    stacked = jnp.concatenate([avg_s, max_s], axis=1)            # (B, 2L)
    conv = jnp.dot(stacked, t_ref[...],
                   preferred_element_type=jnp.float32)           # (B, L)
    sa = jax.nn.sigmoid(conv)                       # (B, L)

    # ---------------- Fused epilogue: ca*x + sa*x == (ca + sa) * x ----------
    attn = ca + sa[:, None, :]                      # (B,C,1)+(B,1,L) -> (B,C,L)
    o_ref[...] = (attn * x).astype(o_ref.dtype)


def _spatial_toeplitz(wsp, L):
    """(2, K) conv taps -> (2L, L) banded matrix with zero-padding baked in.

    conv[b, l] = sum_j avg_s[b, j] * T[j, l] + sum_j max_s[b, j] * T[L + j, l]
    matches nn.Conv1d(2, 1, K, padding=K//2, bias=False) (banded, NOT circulant).
    """
    K = wsp.shape[1]
    pad = K // 2
    j = jnp.arange(L)[:, None]
    l = jnp.arange(L)[None, :]
    k = j - l + pad                                  # tap index feeding output l
    valid = (k >= 0) & (k < K)                       # zero-padding semantics
    kc = jnp.clip(k, 0, K - 1)
    t_avg = jnp.where(valid, wsp[0][kc], 0.0)
    t_max = jnp.where(valid, wsp[1][kc], 0.0)
    return jnp.concatenate([t_avg, t_max], axis=0).astype(jnp.float32)  # (2L, L)


def cbam_pallas(x, w1, w2, wsp, *, num_batch_blocks=None):
    """x: (N, C, L); w1: (C//r, C); w2: (C, C//r); wsp: (2, K)."""
    N, C, L = x.shape
    Ch = w1.shape[0]

    # Tiny host-side prep (free in XLA): banded conv matrix + f32 weights.
    t = _spatial_toeplitz(jnp.asarray(wsp, jnp.float32), L)      # (2L, L)
    w1 = jnp.asarray(w1, jnp.float32)
    w2 = jnp.asarray(w2, jnp.float32)

    # Megacore gating: only split the batch across grid steps / TensorCores
    # when each block is big enough to amortize the ~0.35us per-step overhead.
    if num_batch_blocks is None:
        half_block_bytes = (N // 2) * C * L * x.dtype.itemsize if N % 2 == 0 else 0
        num_batch_blocks = 2 if half_block_bytes >= (512 << 10) else 1
    assert N % num_batch_blocks == 0, "batch must divide evenly across blocks"
    bt = N // num_batch_blocks

    # VMEM budget: double-buffered x/out blocks + weights + f32 temporaries.
    blk = bt * C * L
    est = (2 * 2 * blk * x.dtype.itemsize
           + 3 * blk * 4
           + 2 * (Ch * C + C * Ch + 2 * L * L) * 4)
    vmem_limit = None
    if est > (12 << 20):                    # beyond v5e's 16 MiB scoped default
        vmem_limit = min(2 * est, 64 << 20)
    # TODO(synk): for blocks that would exceed ~the v7x 64 MiB budget, add an
    # L-tiling reduction grid axis (two-pass channel pools accumulated in VMEM
    # scratch + halo'd spatial conv) instead of raising vmem_limit further.

    return pl.pallas_call(
        _cbam_kernel,
        out_shape=jax.ShapeDtypeStruct((N, C, L), x.dtype),
        grid_spec=pltpu.PrefetchScalarGridSpec(
            num_scalar_prefetch=0,
            grid=(num_batch_blocks,),
            in_specs=[
                pl.BlockSpec((bt, C, L), lambda i: (i, 0, 0)),
                pl.BlockSpec((Ch, C), lambda i: (0, 0)),
                pl.BlockSpec((C, Ch), lambda i: (0, 0)),
                pl.BlockSpec((2 * L, L), lambda i: (0, 0)),
            ],
            out_specs=pl.BlockSpec((bt, C, L), lambda i: (i, 0, 0)),
        ),
        compiler_params=pltpu.CompilerParams(
            dimension_semantics=("parallel",),
            vmem_limit_bytes=vmem_limit,
        ),
    )(x, w1, w2, t)


def cbam_ref(x, w1, w2, wsp):
    """Pure-JAX reference mirroring the PyTorch forward (NCL, additive CBAM)."""
    avg = jnp.mean(x, axis=2, keepdims=True)
    mx = jnp.max(x, axis=2, keepdims=True)

    def fc(v):
        h = jnp.maximum(jnp.einsum('oc,ncl->nol', w1, v), 0.0)
        return jnp.einsum('co,nol->ncl', w2, h)

    ca = jax.nn.sigmoid(fc(avg) + fc(mx))
    x1 = ca * x

    avg_s = jnp.mean(x, axis=1, keepdims=True)
    max_s = jnp.max(x, axis=1, keepdims=True)
    st = jnp.concatenate([avg_s, max_s], axis=1)            # (N, 2, L)
    K = wsp.shape[1]
    conv = jax.lax.conv_general_dilated(
        st, wsp[None, :, :], window_strides=(1,),
        padding=[(K // 2, K // 2)],
        dimension_numbers=('NCH', 'OIH', 'NCH'))
    x2 = jax.nn.sigmoid(conv) * x
    return x1 + x2


if __name__ == "__main__":
    # CBAM(channel=32, ratio=16, kernel_size=9) -> hidden = 32 // 16 = 2
    N, C, L = 2, 32, 128
    ratio, K = 16, 9
    Ch = C // ratio

    key = jax.random.PRNGKey(0)
    kx, k1, k2, k3 = jax.random.split(key, 4)
    x = jax.random.normal(kx, (N, C, L), dtype=jnp.float32)
    # Conv1d weights (bias=False); kernel-size-1 weights squeezed to 2-D.
    w1 = jax.random.normal(k1, (Ch, C), dtype=jnp.float32) * 0.1   # fc[0]: (Ch, C, 1)
    w2 = jax.random.normal(k2, (C, Ch), dtype=jnp.float32) * 0.1   # fc[2]: (C, Ch, 1)
    wsp = jax.random.normal(k3, (2, K), dtype=jnp.float32) * 0.1   # spatial: (1, 2, K)

    out = cbam_pallas(x, w1, w2, wsp)
    out = jax.block_until_ready(out)

    ref = cbam_ref(x, w1, w2, wsp)
    assert out.shape == (N, C, L)
    # Tolerance absorbs matmul-pass / reassociation differences between the
    # in-kernel MXU matmuls and the XLA reference while still catching real
    # bugs (padding, transposed weights, wrong taps are O(0.1) errors).
    assert jnp.allclose(out, ref, atol=2e-3, rtol=2e-3), "mismatch vs reference"

    print("KERNEL_OK")
</pallas_src>

<mosaic_0001>
module attributes {stable_mosaic.version = 11 : i64} {
  func.func @_cbam_kernel(%arg0: i32, %arg1: memref<2x32x128xf32, #tpu.memory_space<vmem>>, %arg2: memref<2x32xf32, #tpu.memory_space<vmem>>, %arg3: memref<32x2xf32, #tpu.memory_space<vmem>>, %arg4: memref<256x128xf32, #tpu.memory_space<vmem>>, %arg5: memref<2x32x128xf32, #tpu.memory_space<vmem>>) attributes {dimension_semantics = [#tpu.dimension_semantics<parallel>], iteration_bounds = array<i64: 1>, scalar_prefetch = 0 : i64, scratch_operands = 0 : i64, tpu.core_type = #tpu.core_type<tc>, window_params = [{transform_indices = @transform_0, window_bounds = array<i64: 2, 32, 128>}, {pipeline_mode = #tpu.pipeline_mode<synchronous>, transform_indices = @transform_1, window_bounds = array<i64: 2, 32>}, {pipeline_mode = #tpu.pipeline_mode<synchronous>, transform_indices = @transform_2, window_bounds = array<i64: 32, 2>}, {pipeline_mode = #tpu.pipeline_mode<synchronous>, transform_indices = @transform_3, window_bounds = array<i64: 256, 128>}, {transform_indices = @transform_4, window_bounds = array<i64: 2, 32, 128>}]} {
    %c0 = arith.constant 0 : index
    %c0_0 = arith.constant 0 : index
    %c0_1 = arith.constant 0 : index
    %0 = vector.load %arg1[%c0, %c0_0, %c0_1] : memref<2x32x128xf32, #tpu.memory_space<vmem>>, vector<2x32x128xf32>
    %cst = arith.constant dense<0.000000e+00> : vector<2x32xf32>
    %1 = vector.multi_reduction <add>, %0, %cst [2] : vector<2x32x128xf32> to vector<2x32xf32>
    %2 = vector.shape_cast %1 : vector<2x32xf32> to vector<2x32x1xf32>
    %cst_2 = arith.constant 1.280000e+02 : f32
    %3 = vector.broadcast %cst_2 : f32 to vector<2x32x1xf32>
    %4 = arith.divf %2, %3 : vector<2x32x1xf32>
    %cst_3 = arith.constant dense<0xFF800000> : vector<2x32xf32>
    %5 = vector.multi_reduction <maximumf>, %0, %cst_3 [2] : vector<2x32x128xf32> to vector<2x32xf32>
    %6 = vector.shape_cast %5 : vector<2x32xf32> to vector<2x32x1xf32>
    %7 = tpu.concatenate %4, %6 in 2 : vector<2x32x1xf32>, vector<2x32x1xf32> -> vector<2x32x2xf32>
    %c0_4 = arith.constant 0 : index
    %c0_5 = arith.constant 0 : index
    %8 = vector.load %arg2[%c0_4, %c0_5] : memref<2x32xf32, #tpu.memory_space<vmem>>, vector<2x32xf32>
    %9 = vector.shape_cast %8 : vector<2x32xf32> to vector<1x2x32xf32>
    %10 = vector.broadcast %9 : vector<1x2x32xf32> to vector<2x2x32xf32>
    %c0_6 = arith.constant 0 : index
    %c0_7 = arith.constant 0 : index
    %11 = vector.load %arg3[%c0_6, %c0_7] : memref<32x2xf32, #tpu.memory_space<vmem>>, vector<32x2xf32>
    %12 = vector.shape_cast %11 : vector<32x2xf32> to vector<1x32x2xf32>
    %13 = vector.broadcast %12 : vector<1x32x2xf32> to vector<2x32x2xf32>
    "tpu.trace_start"() <{level = 10 : i32, message = "boc,bcp->bop"}> : () -> ()
    %cst_8 = arith.constant dense<0.000000e+00> : vector<2x2x2xf32>
    %14 = tpu.matmul %10, %7, %cst_8 {dimension_numbers = #tpu.dot_dimension_numbers<[2], [1], [1], [2], [0, 0, 0, 1, 1, 2], [0], [0]>} : vector<2x2x32xf32>, vector<2x32x2xf32>, vector<2x2x2xf32> -> vector<2x2x2xf32>
    "tpu.trace_stop"() : () -> ()
    %cst_9 = arith.constant 0.000000e+00 : f32
    %15 = vector.broadcast %cst_9 : f32 to vector<2x2x2xf32>
    %16 = arith.maximumf %14, %15 : vector<2x2x2xf32>
    "tpu.trace_start"() <{level = 10 : i32, message = "bco,bop->bcp"}> : () -> ()
    %cst_10 = arith.constant dense<0.000000e+00> : vector<2x32x2xf32>
    %17 = tpu.matmul %13, %16, %cst_10 {dimension_numbers = #tpu.dot_dimension_numbers<[2], [1], [1], [2], [0, 0, 0, 1, 1, 2], [0], [0]>} : vector<2x32x2xf32>, vector<2x2x2xf32>, vector<2x32x2xf32> -> vector<2x32x2xf32>
    "tpu.trace_stop"() : () -> ()
    %cst_11 = arith.constant dense<0.000000e+00> : vector<2x32xf32>
    %18 = vector.multi_reduction <add>, %17, %cst_11 [2] : vector<2x32x2xf32> to vector<2x32xf32>
    %19 = vector.shape_cast %18 : vector<2x32xf32> to vector<2x32x1xf32>
    %20 = arith.negf %19 : vector<2x32x1xf32>
    %21 = math.exp %20 : vector<2x32x1xf32>
    %cst_12 = arith.constant 1.000000e+00 : f32
    %22 = vector.broadcast %cst_12 : f32 to vector<2x32x1xf32>
    %23 = arith.addf %22, %21 : vector<2x32x1xf32>
    %24 = arith.divf %22, %23 : vector<2x32x1xf32>
    %cst_13 = arith.constant dense<0.000000e+00> : vector<2x128xf32>
    %25 = vector.multi_reduction <add>, %0, %cst_13 [1] : vector<2x32x128xf32> to vector<2x128xf32>
    %cst_14 = arith.constant 3.200000e+01 : f32
    %26 = vector.broadcast %cst_14 : f32 to vector<2x128xf32>
    %27 = arith.divf %25, %26 : vector<2x128xf32>
    %cst_15 = arith.constant dense<0xFF800000> : vector<2x128xf32>
    %28 = vector.multi_reduction <maximumf>, %0, %cst_15 [1] : vector<2x32x128xf32> to vector<2x128xf32>
    %29 = tpu.concatenate %27, %28 in 1 : vector<2x128xf32>, vector<2x128xf32> -> vector<2x256xf32>
    %c0_16 = arith.constant 0 : index
    %c0_17 = arith.constant 0 : index
    %30 = vector.load %arg4[%c0_16, %c0_17] : memref<256x128xf32, #tpu.memory_space<vmem>>, vector<256x128xf32>
    %cst_18 = arith.constant dense<0.000000e+00> : vector<2x128xf32>
    %31 = tpu.matmul %29, %30, %cst_18 {dimension_numbers = #tpu.dot_dimension_numbers<[1], [0], [0], [1], [0, 0, 1, 1], [], []>} : vector<2x256xf32>, vector<256x128xf32>, vector<2x128xf32> -> vector<2x128xf32>
    %32 = arith.negf %31 : vector<2x128xf32>
    %33 = math.exp %32 : vector<2x128xf32>
    %cst_19 = arith.constant 1.000000e+00 : f32
    %34 = vector.broadcast %cst_19 : f32 to vector<2x128xf32>
    %35 = arith.addf %34, %33 : vector<2x128xf32>
    %36 = arith.divf %34, %35 : vector<2x128xf32>
    %37 = vector.shape_cast %36 : vector<2x128xf32> to vector<2x1x128xf32>
    %38 = vector.broadcast %24 : vector<2x32x1xf32> to vector<2x32x128xf32>
    %39 = vector.broadcast %37 : vector<2x1x128xf32> to vector<2x32x128xf32>
    %40 = arith.addf %38, %39 : vector<2x32x128xf32>
    %41 = arith.mulf %40, %0 : vector<2x32x128xf32>
    %c0_20 = arith.constant 0 : index
    %c0_21 = arith.constant 0 : index
    %c0_22 = arith.constant 0 : index
    %42 = vector.load %arg5[%c0_20, %c0_21, %c0_22] : memref<2x32x128xf32, #tpu.memory_space<vmem>>, vector<2x32x128xf32>
    tpu.vector_store %arg5[%c0_20, %c0_21, %c0_22], %41 {strides = array<i32>} : memref<2x32x128xf32, #tpu.memory_space<vmem>>, vector<2x32x128xf32>,
    return
  }
  func.func @transform_0(%arg0: i32) -> (i32, i32, i32) {
    %c0_i32 = arith.constant 0 : i32
    %c0_i32_0 = arith.constant 0 : i32
    %c0_i32_1 = arith.constant 0 : i32
    return %arg0, %c0_i32, %c0_i32_0 : i32, i32, i32
  }
  func.func @transform_1(%arg0: i32) -> (i32, i32) {
    %c0_i32 = arith.constant 0 : i32
    %c0_i32_0 = arith.constant 0 : i32
    %c0_i32_1 = arith.constant 0 : i32
    return %c0_i32, %c0_i32_0 : i32, i32
  }
  func.func @transform_2(%arg0: i32) -> (i32, i32) {
    %c0_i32 = arith.constant 0 : i32
    %c0_i32_0 = arith.constant 0 : i32
    %c0_i32_1 = arith.constant 0 : i32
    return %c0_i32, %c0_i32_0 : i32, i32
  }
  func.func @transform_3(%arg0: i32) -> (i32, i32) {
    %c0_i32 = arith.constant 0 : i32
    %c0_i32_0 = arith.constant 0 : i32
    %c0_i32_1 = arith.constant 0 : i32
    return %c0_i32, %c0_i32_0 : i32, i32
  }
  func.func @transform_4(%arg0: i32) -> (i32, i32, i32) {
    %c0_i32 = arith.constant 0 : i32
    %c0_i32_0 = arith.constant 0 : i32
    %c0_i32_1 = arith.constant 0 : i32
    return %arg0, %c0_i32, %c0_i32_0 : i32, i32, i32
  }
}

</mosaic_0001>

<bundles_post_ra>
// kernel: tpu_custom_call.1
= control target key start
LH: loop header
LB: loop body
LE: loop exit
PB: predicated region body
PF: predicated region fallthrough
CT: control target
= control target key end

     0   :  { %9 = vsyncpa [#allocation3], 0  ;;  %s1142_s0 = inlined_call_operand.hbm [shape: f32[2,32,128], index: 0, kind: input, shape index: {}]   ;;  %s1143_s1 = inlined_call_operand.vmem [shape: f32[2,32], index: 1, kind: input, shape index: {}]   ;;  %s1144_s2 = inlined_call_operand.vmem [shape: f32[32,2], index: 2, kind: input, shape index: {}]   ;;  %s1145_s3 = inlined_call_operand.hbm [shape: f32[256,128], index: 3, kind: input, shape index: {}]   ;;  %s1146_s4 = inlined_call_operand.hbm [shape: f32[2,32,128], index: 4, kind: output, shape index: {}]  }
   0x1   :  { %10 = vsyncpa [#allocation6], 0 }
   0x2   :  { %11 = vsyncpa [#allocation4], 0  ;;  %s972_s15 = smov [#allocation2]  }
   0x3   :  { %s17_s16 = sshll.u32 %s972_s15, 4  ;;  %s18_s16 = int_to_ptr.vmem [resolvable:$true] %s17_s16 }
   0x4   :  { %s914_s17 = scalar_lea.vmem %s18_s16, 1024  ;;  %p919_p1 = scmp.lt.s32.totalorder %s18_s16, %s18_s16 }
   0x5   :  { %p915_p0 = scmp.ne.s32.totalorder %s18_s16, %s914_s17  ;;  %p920_p2 = scmp.lt.s32.totalorder %s914_s17, %s914_s17 }
   0x7   :  { %p921_p3 = por %p920_p2, %p919_p1 }
   0x9   :  { %p922_p4 = pnand %p921_p3, %p915_p0 }
   0xb   :  { %925 = shalt.err (!%p922_p4)
}
   0xc   :  { %s973_s18 = smov 128   ;;  %s974_s19 = smov 8  }
   0xd   :  { %23 = dma.hbm_to_vmem [thread:$0]  %s1142_s0, 1024, %s18_s16, [#allocation3], %s973_s18, %s973_s18, %s974_s19  }
   0xe   :  { %s975_s22 = smov [#allocation5]  }
   0xf   :  { %s33_s23 = sshll.u32 %s975_s22, 4  ;;  %s34_s23 = int_to_ptr.vmem [resolvable:$true] %s33_s23 }
  0x10   :  { %s934_s24 = scalar_lea.vmem %s34_s23, 4096  ;;  %p939_p6 = scmp.lt.s32.totalorder %s34_s23, %s34_s23 }
  0x11   :  { %p935_p5 = scmp.ne.s32.totalorder %s34_s23, %s934_s24  ;;  %p940_p7 = scmp.lt.s32.totalorder %s934_s24, %s934_s24 }
  0x13   :  { %p941_p8 = por %p940_p7, %p939_p6 }
  0x15   :  { %p942_p9 = pnand %p941_p8, %p935_p5 }
  0x17   :  { %945 = shalt.err (!%p942_p9)
}
  0x18   :  { %39 = dma.hbm_to_vmem [thread:$0]  %s1145_s3, 4096, %s34_s23, [#allocation6], %s973_s18, %s973_s18, %s974_s19  }
  0x19   :  { %966 = dma.done.wait [#allocation3], 1024  }
  0x1a   :  { %967 = vsyncadd [#allocation3], 4294966272 }
  0x1b   :  { %968 = dma.done.wait [#allocation6], 4096  }
  0x1c   :  { %969 = vsyncadd [#allocation6], 4294963200  ;;  %v1017_v0 = vld [vmem:[#allocation2 + $0x18] sm:$0xff]  ;;  %v1021_v1 = vld [vmem:[#allocation2 + $0x10] sm:$0xff]  ;;  %v976_v5 = vmov 0.0   ;;  %vm977_vm0 = vmmov 0  }
  0x1d   :  { %85 = vmax.xlane.f32.xlu1 %v1017_v0  ;;  %60 = vadd.xlane.f32.xlu0 %v1017_v0  ;;  %v1023_v2 = vld [vmem:[#allocation2 + $0x8] sm:$0xff]  ;;  %v1027_v3 = vld [vmem:[#allocation2] sm:$0xff]  ;;  %v1031_v4 = vld [vmem:[#allocation2 + $0x38] sm:$0xff]  ;;  %vm95_vm1 = vcmask 7168   ;;  %vm109_vm2 = vcmask 261120   ;;  %vm255_vm3 = vcmask 15360  }
  0x1e   :  { %824 = vmatprep.subr.mxu1 %v976_v5  ;;  %v1036_v6 = vld [vmem:[#allocation2 + $0x30] sm:$0xff]  ;;  %v1040_v7 = vld [vmem:[#allocation2 + $0x28] sm:$0xff]  ;;  %v1044_v8 = vld [vmem:[#allocation2 + $0x20] sm:$0xff]  ;;  %832 = vmatprep.mubr.msk.f32.mxu1 %vm977_vm0, %v976_v5  ;;  %v517_v43 = vadd.f32 %v1023_v2, %v1027_v3  ;;  %v539_v45 = vmax.f32 %v1023_v2, %v1017_v0  ;;  %v538_v47 = vmax.f32 %v1027_v3, %v1021_v1  ;;  %vm558_vm4 = vcmask 1041409  }
  0x1f   :  { %v104_v26 = vld [vmem:[%s1143_s1] sm:$0x3]  ;;  %v526_v44 = vadd.f32 %v1040_v7, %v1044_v8  ;;  %v548_v48 = vmax.f32 %v1040_v7, %v1031_v4  ;;  %v547_v49 = vmax.f32 %v1044_v8, %v1036_v6  ;;  %v596_v51 = vld [vmem:[#allocation5 + $0xf8] sm:$0xff]  ;;  %v595_v53 = vld [vmem:[#allocation5 + $0xf0] sm:$0xff]  ;;  %vm268_vm5 = vcmask 1041408  }
  0x20   :  { %v1077_v42 = vld [vmem:[%s1144_s2] sm:$0xff]  ;;  %v518_v46 = vadd.f32 %v517_v43, %v1021_v1  ;;  %v580_v52 = vld [vmem:[#allocation5 + $0x78] sm:$0xff]  ;;  %v540_v54 = vmax.f32 %v538_v47, %v539_v45  ;;  %789 = vmatprep.subr.mxu0 %v596_v51  ;;  %v579_v57 = vld [vmem:[#allocation5 + $0x70] sm:$0xff] }
  0x21   :  { %58 = vadd.xlane.f32.xlu0 %v1021_v1  ;;  %56 = vadd.xlane.f32.xlu1 %v1023_v2  ;;  %v527_v50 = vadd.f32 %v526_v44, %v1036_v6  ;;  %v549_v55 = vmax.f32 %v547_v49, %v548_v48  ;;  %v594_v59 = vld [vmem:[#allocation5 + $0xe8] sm:$0xff]  ;;  %v585_v45 = vld [vmem:[#allocation5 + $0xa0] sm:$0xff]  ;;  %v584_v47 = vld [vmem:[#allocation5 + $0x98] sm:$0xff] }
  0x22   :  { %v519_v56 = vadd.f32 %v518_v46, %v1017_v0  ;;  %790 = vmatpush3.msra.mxu0 %v580_v52  ;;  %v541_v60 = vrot.slane %v540_v54, 4  ;;  %v578_v63 = vld [vmem:[#allocation5 + $0x68] sm:$0xff]  ;;  %v569_v46 = vld [vmem:[#allocation5 + $0x20] sm:$0xff]  ;;  %v583_v51 = vld [vmem:[#allocation5 + $0x90] sm:$0xff] }
  0x23   :  { %v528_v58 = vadd.f32 %v527_v50, %v1031_v4  ;;  %v550_v61 = vrot.slane %v549_v55, 4  ;;  %791 = vmatprep.subr.mxu0 %v595_v53  ;;  %v570_v44 = vld [vmem:[#allocation5 + $0x28] sm:$0xff]  ;;  %v568_v50 = vld [vmem:[#allocation5 + $0x18] sm:$0xff]  ;;  %v567_v52 = vld [vmem:[#allocation5 + $0x10] sm:$0xff] }
  0x24   :  { %v520_v62 = vrot.slane %v519_v56, 4  ;;  %792 = vmatpush3.msra.mxu0 %v579_v57  ;;  %v582_v53 = vld [vmem:[#allocation5 + $0x88] sm:$0xff]  ;;  %v581_v57 = vld [vmem:[#allocation5 + $0x80] sm:$0xff] }
  0x25   :  { %83 = vmax.xlane.f32.xlu0 %v1021_v1  ;;  %54 = vadd.xlane.f32.xlu1 %v1027_v3 }
  0x26   :  { %793 = vmatprep.subr.mxu0 %v594_v59 }
  0x27   :  { %794 = vmatpush3.msra.mxu0 %v578_v63  ;;  %v106_v63 = vld [vmem:[%s1144_s2 + $0x8] sm:$0xff] }
  0x29   :  { %81 = vmax.xlane.f32.xlu0 %v1023_v2  ;;  %68 = vadd.xlane.f32.xlu1 %v1031_v4 }
  0x2d   :  { %79 = vmax.xlane.f32.xlu0 %v1027_v3  ;;  %66 = vadd.xlane.f32.xlu1 %v1036_v6 }
  0x31   :  { %93 = vmax.xlane.f32.xlu0 %v1031_v4  ;;  %64 = vadd.xlane.f32.xlu1 %v1040_v7 }
  0x35   :  { %91 = vmax.xlane.f32.xlu0 %v1036_v6  ;;  %62 = vadd.xlane.f32.xlu1 %v1044_v8 }
  0x39   :  { %89 = vmax.xlane.f32.xlu0 %v1040_v7  ;;  %87 = vmax.xlane.f32.xlu1 %v1044_v8 }
  0xa6   :  { %v86_v9 = vpop.xlane.xlu1 %85  ;;  %v61_v10 = vpop.xlane.xlu0 %60 }
  0xa7   :  { %v74_v11 = vmul.f32 0.0078125, %v61_v10  ;;  %v542_v10 = vmax.f32 %v540_v54, %v541_v60 }
  0xa9   :  { %v99_v12 = vsel %vm95_vm1, %v74_v11, %v86_v9  ;;  %v593_v9 = vld [vmem:[#allocation5 + $0xe0] sm:$0xff]  ;;  %v551_v11 = vmax.f32 %v549_v55, %v550_v61 }
  0xaa   :  { %825 = vmatpush3.msra.mxu1 %v99_v12  ;;  %v59_v13 = vpop.xlane.xlu0 %58  ;;  %v57_v14 = vpop.xlane.xlu1 %56  ;;  %v577_v12 = vld [vmem:[#allocation5 + $0x60] sm:$0xff]  ;;  %795 = vmatprep.subr.mxu0 %v593_v9  ;;  %v108_v9 = vld [vmem:[%s1144_s2 + $0x18] sm:$0xff] }
  0xab   :  { %826 = vmatprep.subr.mxu1 %v976_v5  ;;  %v73_v15 = vmul.f32 0.0078125, %v59_v13  ;;  %v72_v19 = vmul.f32 0.0078125, %v57_v14  ;;  %v592_v13 = vld [vmem:[#allocation5 + $0xd8] sm:$0xff]  ;;  %v543_v14 = vrot.slane %v542_v10, 2  ;;  %796 = vmatpush3.msra.mxu0 %v577_v12 }
  0xac   :  { %797 = vmatprep.subr.mxu0 %v592_v13 }
  0xae   :  { %v84_v16 = vpop.xlane.xlu0 %83  ;;  %v55_v17 = vpop.xlane.xlu1 %54 }
  0xaf   :  { %v98_v18 = vsel %vm95_vm1, %v73_v15, %v84_v16  ;;  %v71_v23 = vmul.f32 0.0078125, %v55_v17  ;;  %v552_v15 = vrot.slane %v551_v11, 2  ;;  %v521_v16 = vadd.f32 %v520_v62, %v519_v56  ;;  %v566_v56 = vld [vmem:[#allocation5 + $0x8] sm:$0xff] }
  0xb0   :  { %827 = vmatpush3.msra.mxu1 %v98_v18  ;;  %v576_v18 = vld [vmem:[#allocation5 + $0x58] sm:$0xff] }
  0xb1   :  { %828 = vmatprep.subr.mxu1 %v976_v5  ;;  %798 = vmatpush3.msra.mxu0 %v576_v18 }
  0xb2   :  { %v82_v20 = vpop.xlane.xlu0 %81  ;;  %v69_v21 = vpop.xlane.xlu1 %68 }
  0xb3   :  { %v97_v22 = vsel %vm95_vm1, %v72_v19, %v82_v20  ;;  %v78_v28 = vmul.f32 0.0078125, %v69_v21  ;;  %v591_v19 = vld [vmem:[#allocation5 + $0xd0] sm:$0xff]  ;;  %v544_v20 = vmax.f32 %v542_v10, %v543_v14  ;;  %v553_v21 = vmax.f32 %v551_v11, %v552_v15 }
  0xb4   :  { %829 = vmatpush3.msra.mxu1 %v97_v22  ;;  %v575_v22 = vld [vmem:[#allocation5 + $0x50] sm:$0xff]  ;;  %799 = vmatprep.subr.mxu0 %v591_v19 }
  0xb5   :  { %830 = vmatprep.subr.mxu1 %v976_v5  ;;  %800 = vmatpush3.msra.mxu0 %v575_v22 }
  0xb6   :  { %v80_v24 = vpop.xlane.xlu0 %79  ;;  %v67_v25 = vpop.xlane.xlu1 %66 }
  0xb7   :  { %v96_v27 = vsel %vm95_vm1, %v71_v23, %v80_v24  ;;  %v77_v32 = vmul.f32 0.0078125, %v67_v25  ;;  %v590_v23 = vld [vmem:[#allocation5 + $0xc8] sm:$0xff]  ;;  %v545_v24 = vrot.slane %v544_v20, 1  ;;  %v554_v25 = vrot.slane %v553_v21, 1 }
  0xb8   :  { %831 = vmatpush3.msra.mxu1 %v96_v27  ;;  %801 = vmatprep.subr.mxu0 %v590_v23 }
  0xb9   :  { %835 = vmatprep.subr.mxu1 %v976_v5  ;;  %833 = vmatmul.mubr.msk.f32.vlgmr.msra.gmra.mxu1 %vm109_vm2, %v104_v26 }
  0xba   :  { %v94_v29 = vpop.xlane.xlu0 %93  ;;  %v65_v30 = vpop.xlane.xlu1 %64  ;;  %843 = vmatprep.mubr.msk.f32.mxu1 %vm977_vm0, %v976_v5 }
  0xbb   :  { %v103_v31 = vsel %vm95_vm1, %v78_v28, %v94_v29  ;;  %v76_v36 = vmul.f32 0.0078125, %v65_v30  ;;  %v574_v28 = vld [vmem:[#allocation5 + $0x48] sm:$0xff]  ;;  %v589_v29 = vld [vmem:[#allocation5 + $0xc0] sm:$0xff]  ;;  %v546_v30 = vmax.f32 %v544_v20, %v545_v24 }
  0xbc   :  { %836 = vmatpush3.msra.mxu1 %v103_v31  ;;  %v555_v31 = vmax.f32 %v553_v21, %v554_v25  ;;  %802 = vmatpush3.msra.mxu0 %v574_v28 }
  0xbd   :  { %837 = vmatprep.subr.mxu1 %v976_v5  ;;  %803 = vmatprep.subr.mxu0 %v589_v29 }
  0xbe   :  { %v92_v33 = vpop.xlane.xlu0 %91  ;;  %v63_v34 = vpop.xlane.xlu1 %62 }
  0xbf   :  { %v102_v35 = vsel %vm95_vm1, %v77_v32, %v92_v33  ;;  %v75_v37 = vmul.f32 0.0078125, %v63_v34  ;;  %v573_v32 = vld [vmem:[#allocation5 + $0x40] sm:$0xff]  ;;  %v588_v33 = vld [vmem:[#allocation5 + $0xb8] sm:$0xff]  ;;  %v563_v34 = vsel %vm558_vm4, %v555_v31, %v546_v30 }
  0xc0   :  { %838 = vmatpush3.msra.mxu1 %v102_v35  ;;  %661 = vmatprep.mubr.f32.mxu0 %v563_v34 }
  0xc1   :  { %839 = vmatprep.subr.mxu1 %v976_v5  ;;  %804 = vmatpush3.msra.mxu0 %v573_v32 }
  0xc2   :  { %v90_v38 = vpop.xlane.xlu0 %89  ;;  %v88_v39 = vpop.xlane.xlu1 %87  ;;  %805 = vmatprep.subr.mxu0 %v588_v33 }
  0xc3   :  { %v101_v40 = vsel %vm95_vm1, %v76_v36, %v90_v38  ;;  %v100_v41 = vsel %vm95_vm1, %v75_v37, %v88_v39  ;;  %v572_v37 = vld [vmem:[#allocation5 + $0x38] sm:$0xff]  ;;  %v587_v38 = vld [vmem:[#allocation5 + $0xb0] sm:$0xff] }
  0xc4   :  { %840 = vmatpush3.msra.mxu1 %v101_v40  ;;  %v571_v39 = vld [vmem:[#allocation5 + $0x30] sm:$0xff]  ;;  %806 = vmatpush3.msra.mxu0 %v572_v37  ;;  %v586_v40 = vld [vmem:[#allocation5 + $0xa8] sm:$0xff] }
  0xc5   :  { %841 = vmatprep.subr.mxu1 %v976_v5  ;;  %v529_v5 = vrot.slane %v528_v58, 4  ;;  %807 = vmatprep.subr.mxu0 %v587_v38 }
  0xc6   :  { %842 = vmatpush3.msra.mxu1 %v100_v41  ;;  %808 = vmatpush3.msra.mxu0 %v571_v39 }
  0xc7   :  { %844 = vmatmul.mubr.msk.f32.vlgmr.msra.gmra.mxu1 %vm109_vm2, %v104_v26  ;;  %v530_v17 = vadd.f32 %v529_v5, %v528_v58  ;;  %v522_v26 = vrot.slane %v521_v16, 2  ;;  %809 = vmatprep.subr.mxu0 %v586_v40  ;;  %v565_v58 = vld [vmem:[#allocation5] sm:$0xff]  ;;  %v107_v5 = vld [vmem:[%s1144_s2 + $0x10] sm:$0xff]  ;;  %s979_s2 = smov [#allocation7]  }
  0xc8   :  { %848 = vmatprep.mubr.msk.f32.mxu1 %vm255_vm3, %v1077_v42  ;;  %810 = vmatpush3.msra.mxu0 %v570_v44  ;;  %s735_s8 = sshll.u32 %s979_s2, 4  ;;  %s736_s8 = int_to_ptr.vmem [resolvable:$true] %s735_s8 }
  0xc9   :  { %v531_v27 = vrot.slane %v530_v17, 2  ;;  %v523_v35 = vadd.f32 %v522_v26, %v521_v16  ;;  %811 = vmatprep.subr.mxu0 %v585_v45  ;;  %v677_v45 = vlaneseq  ;;  %s946_s9 = scalar_lea.vmem %s736_s8, 1024  ;;  %p951_p11 = scmp.lt.s32.totalorder %s736_s8, %s736_s8 }
  0xca   :  { %812 = vmatpush3.msra.mxu0 %v569_v46  ;;  %p947_p10 = scmp.ne.s32.totalorder %s736_s8, %s946_s9  ;;  %p952_p12 = scmp.lt.s32.totalorder %s946_s9, %s946_s9 }
  0xcb   :  { %v532_v36 = vadd.f32 %v531_v27, %v530_v17  ;;  %v524_v41 = vrot.slane %v523_v35, 1  ;;  %813 = vmatprep.subr.mxu0 %v584_v47  ;;  %v678_v47 = vshrl.u32 %v677_v45, 7 }
  0xcc   :  { %814 = vmatpush3.msra.mxu0 %v568_v50  ;;  %p953_p13 = por %p952_p12, %p951_p11 }
  0xcd   :  { %v533_v43 = vrot.slane %v532_v36, 1  ;;  %v525_v48 = vadd.f32 %v524_v41, %v523_v35  ;;  %815 = vmatprep.subr.mxu0 %v583_v51 }
  0xce   :  { %816 = vmatpush3.msra.mxu0 %v567_v52  ;;  %p954_p0 = pnand %p953_p13, %p947_p10 }
  0xcf   :  { %v534_v49 = vadd.f32 %v533_v43, %v532_v36  ;;  %v536_v54 = vmul.f32 0.03125, %v525_v48  ;;  %817 = vmatprep.subr.mxu0 %v582_v53  ;;  %v978_v43 = vmov 1966171168  }
  0xd0   :  { %818 = vmatpush3.msra.mxu0 %v566_v56  ;;  %v675_v44 = vunpack.c.l.s4 %v978_v43 }
  0xd1   :  { %v537_v55 = vmul.f32 0.03125, %v534_v49  ;;  %819 = vmatprep.subr.mxu0 %v581_v57 }
  0xd2   :  { %820 = vmatpush3.msra.mxu0 %v565_v58  ;;  %v676_v46 = vunpack.c.0.s8 %v675_v44 }
  0xd3   :  { %v559_v59 = vsel %vm558_vm4, %v537_v55, %v536_v54 }
  0xd4   :  { %662 = vmatmul.mubr.f32.vlgmr.msra.gmra.mxu0 %v559_v59  ;;  %v679_v53 = vsub.s32 %v676_v46, %v678_v47 }
 0x179   :  { %v179_v60 = vpop.f32.mrf.mxu1 }
 0x17a   :  { %v253_v61 = vmax.f32 %v179_v60, 0.0 }
 0x17b   :  { %v834_v62 = vpop.f32.mrf.mxu1 }
 0x17c   :  { %846 = vmatprep.subr.msk.mxu1 %vm268_vm5, %v253_v61 }
 0x17d   :  { %847 = vmatpush3.msk.msra.mxu1 %vm268_vm5, %v253_v61 }
 0x17e   :  { %849 = vmatmul.mubr.msk.f32.vlgmr.msra.gmra.mxu1 %vm255_vm3, %v106_v63 }
 0x17f   :  { %851 = vmatprep.mubr.msk.f32.mxu1 %vm255_vm3, %v107_v5 }
 0x182   :  { %852 = vmatmul.mubr.msk.f32.gmra.mxu1 %vm255_vm3, %v108_v9 }
 0x183   :  { %856 = vmatprep.mubr.msk.f32.mxu1 %vm255_vm3, %v1077_v42 }
 0x187   :  { %v249_v10 = vpop.f32.mrf.mxu1 }
 0x188   :  { %v254_v11 = vmax.f32 %v249_v10, 0.0 }
 0x189   :  { %v845_v12 = vpop.f32.mrf.mxu1 }
 0x18a   :  { %854 = vmatprep.subr.msk.mxu1 %vm268_vm5, %v254_v11  ;;  %v698_v12 = vsub.s32 0, %v678_v47 }
 0x18b   :  { %855 = vmatpush3.msk.msra.mxu1 %vm268_vm5, %v254_v11 }
 0x18c   :  { %857 = vmatmul.mubr.msk.f32.vlgmr.msra.gmra.mxu1 %vm255_vm3, %v106_v63 }
 0x18d   :  { %859 = vmatprep.mubr.msk.f32.mxu1 %vm255_vm3, %v107_v5 }
 0x190   :  { %860 = vmatmul.mubr.msk.f32.gmra.mxu1 %vm255_vm3, %v108_v9 }
 0x194   :  { %v821_v28 = vpop.f32.mrf.mxu0 }
 0x196   :  { %v822_v29 = vpop.f32.mrf.mxu0 }
 0x197   :  { %v823_v30 = vadd.f32 %v822_v29, %v821_v28 }
 0x199   :  { %v768_v31 = vmul.f32 -1.442695, %v823_v30 }
 0x19b   :  { %870 = vpow2.f32 %v768_v31 }
 0x1a8   :  { %v871_v32 = vpop.eup %870 }
 0x1a9   :  { %v670_v33 = vadd.f32 1.0, %v871_v32 }
 0x23e   :  { %v850_v13 = vpop.f32.mrf.mxu1 }
 0x23f   :  { %v448_v14 = vsel %vm255_vm3, %v850_v13, 0.0 }
 0x240   :  { %v338_v15 = vpop.f32.mrf.mxu1  ;;  %449 = vadd.xlane.f32.xlu1 %v448_v14 }
 0x241   :  { %v445_v42 = vsel %vm255_vm3, %v338_v15, 0.0 }
 0x242   :  { %446 = vadd.xlane.f32.xlu0 %v445_v42  ;;  %v853_v16 = vpop.f32.mrf.mxu1 }
 0x243   :  { %v454_v17 = vsel %vm255_vm3, %v853_v16, 0.0 }
 0x244   :  { %v348_v18 = vpop.f32.mrf.mxu1  ;;  %455 = vadd.xlane.f32.xlu1 %v454_v17 }
 0x245   :  { %v451_v19 = vsel %vm255_vm3, %v348_v18, 0.0 }
 0x246   :  { %452 = vadd.xlane.f32.xlu0 %v451_v19 }
 0x24c   :  { %v858_v20 = vpop.f32.mrf.mxu1 }
 0x24d   :  { %v460_v21 = vsel %vm255_vm3, %v858_v20, 0.0 }
 0x24e   :  { %v426_v22 = vpop.f32.mrf.mxu1  ;;  %461 = vadd.xlane.f32.xlu1 %v460_v21 }
 0x24f   :  { %v457_v23 = vsel %vm255_vm3, %v426_v22, 0.0 }
 0x250   :  { %458 = vadd.xlane.f32.xlu0 %v457_v23  ;;  %v861_v24 = vpop.f32.mrf.mxu1 }
 0x251   :  { %v466_v25 = vsel %vm255_vm3, %v861_v24, 0.0 }
 0x252   :  { %v436_v26 = vpop.f32.mrf.mxu1  ;;  %467 = vadd.xlane.f32.xlu1 %v466_v25 }
 0x253   :  { %v463_v27 = vsel %vm255_vm3, %v436_v26, 0.0 }
 0x254   :  { %464 = vadd.xlane.f32.xlu0 %v463_v27 }
 0x2c9   :  { %v450_v34 = vpop.xlane.xlu1 %449 }
 0x2ca   :  { %v761_v35 = vmul.f32 -1.442695, %v450_v34 }
 0x2cb   :  { %v447_v36 = vpop.xlane.xlu0 %446 }
 0x2cc   :  { %872 = vpow2.f32 %v761_v35  ;;  %v760_v37 = vmul.f32 -1.442695, %v447_v36 }
 0x2cd   :  { %874 = vrcp.f32 %v670_v33  ;;  %v456_v38 = vpop.xlane.xlu1 %455 }
 0x2ce   :  { %876 = vpow2.f32 %v760_v37  ;;  %v763_v39 = vmul.f32 -1.442695, %v456_v38 }
 0x2cf   :  { %v453_v40 = vpop.xlane.xlu0 %452 }
 0x2d0   :  { %878 = vpow2.f32 %v763_v39  ;;  %v762_v41 = vmul.f32 -1.442695, %v453_v40 }
 0x2d2   :  { %880 = vpow2.f32 %v762_v41 }
 0x2d7   :  { %v462_v48 = vpop.xlane.xlu1 %461 }
 0x2d8   :  { %v765_v49 = vmul.f32 -1.442695, %v462_v48 }
 0x2d9   :  { %v873_v50 = vpop.eup %872  ;;  %v459_v51 = vpop.xlane.xlu0 %458 }
 0x2da   :  { %v875_v52 = vpop.eup %874  ;;  %v494_v54 = vadd.f32 1.0, %v873_v50  ;;  %882 = vpow2.f32 %v765_v49  ;;  %v764_v55 = vmul.f32 -1.442695, %v459_v51 }
 0x2db   :  { %v877_v56 = vpop.eup %876  ;;  %v468_v57 = vpop.xlane.xlu1 %467  ;;  %v680_v62 = vrot.slane %v875_v52, %v679_v53 }
 0x2dc   :  { %884 = vrcp.f32 %v494_v54  ;;  %v493_v58 = vadd.f32 1.0, %v877_v56  ;;  %v767_v59 = vmul.f32 -1.442695, %v468_v57 }
 0x2dd   :  { %v879_v60 = vpop.eup %878  ;;  %886 = vpow2.f32 %v764_v55  ;;  %v465_v61 = vpop.xlane.xlu0 %464  ;;  %v688_v11 = vrot.slane %v680_v62, %v679_v53  ;;  %v681_v21 = vcombine.high %v680_v62, %v680_v62 }
 0x2de   :  { %888 = vrcp.f32 %v493_v58  ;;  %v496_v63 = vadd.f32 1.0, %v879_v60  ;;  %v766_v5 = vmul.f32 -1.442695, %v465_v61 }
 0x2df   :  { %v881_v9 = vpop.eup %880  ;;  %890 = vpow2.f32 %v767_v59  ;;  %v699_v13 = vrot.slane %v688_v11, %v698_v12  ;;  %v695_v31 = vrot.slane %v681_v21, %v679_v53 }
 0x2e0   :  { %892 = vrcp.f32 %v496_v63  ;;  %v495_v10 = vadd.f32 1.0, %v881_v9 }
 0x2e1   :  { %894 = vpow2.f32 %v766_v5  ;;  %v703_v34 = vrot.slane %v695_v31, %v698_v12 }
 0x2e2   :  { %896 = vrcp.f32 %v495_v10 }
 0x2e7   :  { %v883_v14 = vpop.eup %882 }
 0x2e8   :  { %v498_v15 = vadd.f32 1.0, %v883_v14 }
 0x2e9   :  { %v885_v42 = vpop.eup %884 }
 0x2ea   :  { %v887_v16 = vpop.eup %886  ;;  %v707_v17 = vadd.f32 %v885_v42, %v699_v13  ;;  %898 = vrcp.f32 %v498_v15 }
 0x2eb   :  { %v889_v18 = vpop.eup %888  ;;  %v497_v19 = vadd.f32 1.0, %v887_v16 }
 0x2ec   :  { %v891_v20 = vpop.eup %890  ;;  %v715_v22 = vmul.f32 %v707_v17, %v1023_v2  ;;  %v706_v23 = vadd.f32 %v889_v18, %v699_v13 }
 0x2ed   :  { %v893_v24 = vpop.eup %892  ;;  %900 = vrcp.f32 %v497_v19  ;;  %v500_v25 = vadd.f32 1.0, %v891_v20 }
 0x2ee   :  { %v895_v26 = vpop.eup %894  ;;  %723 = vst [vmem:[#allocation7 + $0x8] sm:$0xff] %v715_v22  ;;  %v714_v27 = vmul.f32 %v706_v23, %v1027_v3  ;;  %v709_v28 = vadd.f32 %v893_v24, %v699_v13 }
 0x2ef   :  { %v897_v29 = vpop.eup %896  ;;  %902 = vrcp.f32 %v500_v25  ;;  %v499_v30 = vadd.f32 1.0, %v895_v26 }
 0x2f0   :  { %722 = vst [vmem:[#allocation7] sm:$0xff] %v714_v27  ;;  %v717_v32 = vmul.f32 %v709_v28, %v1017_v0  ;;  %v708_v33 = vadd.f32 %v897_v29, %v699_v13 }
 0x2f1   :  { %904 = vrcp.f32 %v499_v30 }
 0x2f2   :  { %725 = vst [vmem:[#allocation7 + $0x18] sm:$0xff] %v717_v32  ;;  %v716_v2 = vmul.f32 %v708_v33, %v1021_v1 }
 0x2f4   :  { %724 = vst [vmem:[#allocation7 + $0x10] sm:$0xff] %v716_v2 }
 0x2f7   :  { %v899_v35 = vpop.eup %898 }
 0x2f8   :  { %v711_v36 = vadd.f32 %v899_v35, %v703_v34 }
 0x2fa   :  { %v901_v37 = vpop.eup %900  ;;  %v719_v3 = vmul.f32 %v711_v36, %v1040_v7 }
 0x2fb   :  { %v710_v38 = vadd.f32 %v901_v37, %v703_v34 }
 0x2fc   :  { %v903_v39 = vpop.eup %902  ;;  %727 = vst [vmem:[#allocation7 + $0x28] sm:$0xff] %v719_v3 }
 0x2fd   :  { %v718_v40 = vmul.f32 %v710_v38, %v1044_v8  ;;  %v713_v41 = vadd.f32 %v903_v39, %v703_v34 }
 0x2fe   :  { %v905_v43 = vpop.eup %904 }
 0x2ff   :  { %726 = vst [vmem:[#allocation7 + $0x20] sm:$0xff] %v718_v40  ;;  %v721_v0 = vmul.f32 %v713_v41, %v1031_v4  ;;  %v712_v1 = vadd.f32 %v905_v43, %v703_v34 }
 0x301   :  { %729 = vst [vmem:[#allocation7 + $0x38] sm:$0xff] %v721_v0  ;;  %v720_v44 = vmul.f32 %v712_v1, %v1036_v6 }
 0x303   :  { %728 = vst [vmem:[#allocation7 + $0x30] sm:$0xff] %v720_v44 }
 0x304   :  { %957 = shalt.err (!%p954_p0)
}
 0x305   :  { %741 = dma.vmem_to_hbm [thread:$0]  %s736_s8, 1024, %s1146_s4, [#allocation4], %s973_s18, %s973_s18, %s974_s19  }
 0x306   :  { %970 = dma.done.wait [#allocation4], 1024  }
 0x307   :  { %971 = vsyncadd [#allocation4], 4294966272 }
 0x308   :  { %745 = vsyncpa [#allocation3], 1 }
 0x309   :  { %746 = vsyncpa [#allocation6], 1 }
 0x30a   :  { %747 = vsyncpa [#allocation4], 1 }

</bundles_post_ra>
